<compile_context>
chip_gen: v6e
topology: v6e:2x2x1
jax: 0.10.0
libtpu: 0.0.40
codegen_flags: <defaults>
</compile_context>

<pallas_src>
import functools

import jax
import jax.numpy as jnp
from jax.experimental import pallas as pl
from jax.experimental.pallas import tpu as pltpu


def _conv1x1_kernel(x_ref, w_ref, b_ref, o_ref):
    # x_ref: (Cin, T)   -- one image's channel-major spatial tile
    # w_ref: (Cout, Cin)
    # b_ref: (Cout, 1)
    # o_ref: (Cout, T)  -- lane-dense output tile (T is a multiple of 128)
    acc = jnp.dot(w_ref[...], x_ref[...], preferred_element_type=jnp.float32)
    o_ref[...] = (acc + b_ref[...]).astype(o_ref.dtype)


def _pick_spatial_tile(cin, cout, hw, itemsize,
                       vmem_budget_bytes=20 * 1024 * 1024,
                       max_tile=8192):
    """Largest multiple-of-128 spatial tile that fits the VMEM budget.

    Budget accounts for double-buffered input (Cin x T) and output (Cout x T)
    tiles; weight/bias are negligible. Clamped to the 128-rounded spatial
    extent so small inputs don't over-pad.
    """
    hw128 = ((hw + 127) // 128) * 128
    per_col = (cin + cout) * itemsize * 2  # 2x for double buffering
    fit_cols = max(128, (vmem_budget_bytes // max(per_col, 1)) // 128 * 128)
    return int(min(hw128, min(max_tile, fit_cols)))


@jax.jit
def conv1x1_flatten(x_nchw, weight, bias):
    """1x1 Conv2d + flatten(start_dim=1), matching PyTorch semantics.

    x_nchw: (N, Cin, H, W)
    weight: (Cout, Cin)   (the (1,1) kernel dims squeezed out)
    bias:   (Cout,)
    returns: (N, Cout*H*W)
    """
    N, Cin, H, W = x_nchw.shape
    Cout = weight.shape[0]
    HW = H * W

    tile = _pick_spatial_tile(Cin, Cout, HW, x_nchw.dtype.itemsize)
    HW_pad = ((HW + tile - 1) // tile) * tile

    # Free reshape: stays in NCHW memory order, no transpose passes.
    x3 = x_nchw.reshape(N, Cin, HW)
    if HW_pad != HW:
        x3 = jnp.pad(x3, ((0, 0), (0, 0), (0, HW_pad - HW)))

    b_col = bias.reshape(Cout, 1)

    grid = (N, HW_pad // tile)

    cost = pl.CostEstimate(
        flops=2 * N * HW_pad * Cin * Cout,
        transcendentals=0,
        bytes_accessed=x_nchw.dtype.itemsize
        * (N * Cin * HW_pad + N * Cout * HW_pad + Cout * Cin + Cout),
    )

    y3 = pl.pallas_call(
        _conv1x1_kernel,
        out_shape=jax.ShapeDtypeStruct((N, Cout, HW_pad), x_nchw.dtype),
        grid_spec=pltpu.PrefetchScalarGridSpec(
            num_scalar_prefetch=0,
            grid=grid,
            in_specs=[
                # (Cin, tile) slice of image n; leading batch dim squeezed.
                pl.BlockSpec((None, Cin, tile), lambda n, j: (n, 0, j)),
                # Weight / bias resident in VMEM across the whole grid.
                pl.BlockSpec((Cout, Cin), lambda n, j: (0, 0)),
                pl.BlockSpec((Cout, 1), lambda n, j: (0, 0)),
            ],
            out_specs=pl.BlockSpec((None, Cout, tile), lambda n, j: (n, 0, j)),
        ),
        compiler_params=pltpu.CompilerParams(
            dimension_semantics=("parallel", "parallel"),
        ),
        cost_estimate=cost,
    )(x3, weight, b_col)

    if HW_pad != HW:
        y3 = y3[:, :, :HW]
    # (N, Cout, H*W) -> (N, Cout*H*W): contiguous, free, matches torch.flatten.
    return y3.reshape(N, Cout * HW)


def init_params(key, in_features, out_features, dtype=jnp.float32):
    """Mirror the PyTorch module's reset_parameters:
    kaiming_uniform_(a=sqrt(5)) on weight -> bound = 1/sqrt(fan_in),
    bias ~ U(-1/sqrt(fan_in), 1/sqrt(fan_in)); fan_in = in_features (1x1 kernel).
    """
    kw, kb = jax.random.split(key)
    fan_in = in_features  # 1x1 kernel
    bound = fan_in ** -0.5
    weight = jax.random.uniform(
        kw, (out_features, in_features), dtype=dtype, minval=-bound, maxval=bound
    )
    bias = jax.random.uniform(
        kb, (out_features,), dtype=dtype, minval=-bound, maxval=bound
    )
    return weight, bias


if __name__ == "__main__":
    key = jax.random.PRNGKey(0)
    k_x, k_p = jax.random.split(key)

    N, Cin, H, W = 2, 4, 16, 16
    Cout = 8

    x = jax.random.normal(k_x, (N, Cin, H, W), dtype=jnp.float32)
    weight, bias = init_params(k_p, Cin, Cout)

    out = conv1x1_flatten(x, weight, bias)
    out = jax.block_until_ready(out)

    # Sanity check vs pure-JAX reference (1x1 conv == channel einsum).
    ref = jnp.einsum("nchw,oc->nohw", x, weight) + bias[None, :, None, None]
    ref = ref.reshape(N, Cout * H * W)
    assert out.shape == (N, Cout * H * W), out.shape
    assert jnp.allclose(out, ref, atol=1e-5, rtol=1e-5), "mismatch vs reference"

    print("KERNEL_OK")
</pallas_src>

<mosaic_0001>
module attributes {stable_mosaic.version = 11 : i64} {
  func.func @_conv1x1_kernel(%arg0: i32, %arg1: i32, %arg2: memref<1x4x256xf32, #tpu.memory_space<vmem>>, %arg3: memref<8x4xf32, #tpu.memory_space<vmem>>, %arg4: memref<8x1xf32, #tpu.memory_space<vmem>>, %arg5: memref<1x8x256xf32, #tpu.memory_space<vmem>>) attributes {dimension_semantics = [#tpu.dimension_semantics<parallel>, #tpu.dimension_semantics<parallel>], iteration_bounds = array<i64: 2, 1>, scalar_prefetch = 0 : i64, scratch_operands = 0 : i64, tpu.core_type = #tpu.core_type<tc>, window_params = [{transform_indices = @transform_0, window_bounds = array<i64: 1, 4, 256>}, {pipeline_mode = #tpu.pipeline_mode<synchronous>, transform_indices = @transform_1, window_bounds = array<i64: 8, 4>}, {pipeline_mode = #tpu.pipeline_mode<synchronous>, transform_indices = @transform_2, window_bounds = array<i64: 8, 1>}, {transform_indices = @transform_3, window_bounds = array<i64: 1, 8, 256>}]} {
    %c0 = arith.constant 0 : index
    %c0_0 = arith.constant 0 : index
    %0 = vector.load %arg3[%c0, %c0_0] : memref<8x4xf32, #tpu.memory_space<vmem>>, vector<8x4xf32>
    %c0_1 = arith.constant 0 : index
    %c0_2 = arith.constant 0 : index
    %c0_3 = arith.constant 0 : index
    %1 = vector.load %arg2[%c0_1, %c0_2, %c0_3] : memref<1x4x256xf32, #tpu.memory_space<vmem>>, vector<1x4x256xf32>
    %2 = vector.shape_cast %1 : vector<1x4x256xf32> to vector<4x256xf32>
    %cst = arith.constant dense<0.000000e+00> : vector<8x256xf32>
    %3 = tpu.matmul %0, %2, %cst {dimension_numbers = #tpu.dot_dimension_numbers<[1], [0], [0], [1], [0, 0, 1, 1], [], []>} : vector<8x4xf32>, vector<4x256xf32>, vector<8x256xf32> -> vector<8x256xf32>
    %c0_4 = arith.constant 0 : index
    %c0_5 = arith.constant 0 : index
    %4 = vector.load %arg4[%c0_4, %c0_5] : memref<8x1xf32, #tpu.memory_space<vmem>>, vector<8x1xf32>
    %5 = vector.broadcast %4 : vector<8x1xf32> to vector<8x256xf32>
    %6 = arith.addf %3, %5 : vector<8x256xf32>
    %c0_6 = arith.constant 0 : index
    %c0_7 = arith.constant 0 : index
    %c0_8 = arith.constant 0 : index
    %7 = vector.load %arg5[%c0_6, %c0_7, %c0_8] : memref<1x8x256xf32, #tpu.memory_space<vmem>>, vector<1x8x256xf32>
    %8 = vector.shape_cast %7 : vector<1x8x256xf32> to vector<8x256xf32>
    %9 = vector.shape_cast %6 : vector<8x256xf32> to vector<1x8x256xf32>
    tpu.vector_store %arg5[%c0_6, %c0_7, %c0_8], %9 {strides = array<i32>} : memref<1x8x256xf32, #tpu.memory_space<vmem>>, vector<1x8x256xf32>,
    return
  }
  func.func @transform_0(%arg0: i32, %arg1: i32) -> (i32, i32, i32) {
    %c0_i32 = arith.constant 0 : i32
    %c0_i32_0 = arith.constant 0 : i32
    return %arg0, %c0_i32, %arg1 : i32, i32, i32
  }
  func.func @transform_1(%arg0: i32, %arg1: i32) -> (i32, i32) {
    %c0_i32 = arith.constant 0 : i32
    %c0_i32_0 = arith.constant 0 : i32
    %c0_i32_1 = arith.constant 0 : i32
    return %c0_i32, %c0_i32_0 : i32, i32
  }
  func.func @transform_2(%arg0: i32, %arg1: i32) -> (i32, i32) {
    %c0_i32 = arith.constant 0 : i32
    %c0_i32_0 = arith.constant 0 : i32
    %c0_i32_1 = arith.constant 0 : i32
    return %c0_i32, %c0_i32_0 : i32, i32
  }
  func.func @transform_3(%arg0: i32, %arg1: i32) -> (i32, i32, i32) {
    %c0_i32 = arith.constant 0 : i32
    %c0_i32_0 = arith.constant 0 : i32
    return %arg0, %c0_i32, %arg1 : i32, i32, i32
  }
}

</mosaic_0001>

<bundles_post_ra>
// kernel: conv1x1_flatten.1
= control target key start
LH: loop header
LB: loop body
LE: loop exit
PB: predicated region body
PF: predicated region fallthrough
CT: control target
= control target key end

     0   :  { %s479_s12 = smov 0   ;;  %s481_s13 = smov 0   ;;  %s518_s0 = inlined_call_operand.vmem [shape: f32[2,4,256], index: 0, kind: input, shape index: {}]   ;;  %s519_s1 = inlined_call_operand.vmem [shape: f32[8,4], index: 1, kind: input, shape index: {}]   ;;  %s520_s2 = inlined_call_operand.vmem [shape: f32[8,1], index: 2, kind: input, shape index: {}]   ;;  %s521_s3 = inlined_call_operand.vmem [shape: f32[2,8,256], index: 3, kind: output, shape index: {}]  }
   0x1   :  { %s483_s14 = smov 0  }
   0x2 LB: > { %s25_s15 = sadd.s32 1, %s451_s13  ;;  %p393_p0 = scmp.ge.s32.totalorder %s455_s14, 1  ;;  %s455_s14 = sphi %s483_s14, %s13_s14   ;;  %s451_s13 = sphi %s481_s13, %s523_s13   ;;  %s447_s12 = sphi %s479_s12, %s522_s12  }
   0x3   : > { %p27_p1 = scmp.ge.s32.totalorder %s25_s15, 2  ;;  %p158_p2 = scmp.lt.s32.totalorder %s455_s14, 3 }
   0x5   : > { %s525_s15 = smov (%p27_p1, %s25_s15), 0  ;;  %p159_p3 = pnand %p393_p0, %p158_p2 }
   0x6   : > { %p191_p4 = scmp.lt.s32.totalorder (!%p159_p3), %s447_s12, 1 }
   0x7   : > { %162 = sbr.rel (%p159_p3) target bundleno = 218 (0xda), region = 32 }
   0xc   : > { %v457_v0 = vmov 0.0   ;;  %v458_v1 = vmov 0   ;;  %v212_v2 = vld [vmem:[%s520_s2] sm:$0xff]  ;;  %s527_s12 = smov (!%p191_p4, %s447_s12), 1  ;;  %vm224_vm0 = vcmask 1043456   ;;  %vm220_vm1 = vcmask 31744  }
   0xd   : > { %293 = vmatprep.mubr.f32.mxu0 %v457_v0  ;;  %431 = vset.pattern.permute.xlu0 %v458_v1  ;;  %s403_s18 = sshll.u32 %s527_s12, 3  ;;  %v210_v5 = vld [vmem:[%s519_s1] sm:$0xff]  ;;  %s404_s24 = sshll.u32 %s527_s12, 4 }
   0xe   : > { %215 = vperm.xlu0 %431, %v212_v2   ;;  %s198_s21 = scalar_lea.vmem %s518_s0, %s403_s18  ;;  %s208_s27 = scalar_lea.vmem %s521_s3, %s404_s24 }
   0xf   : > { %v211_v3 = vld [vmem:[%s198_s21] sm:$0xff] }
  0x10   : > { %v219_v4 = vcombine.high %v211_v3, %v211_v3 }
  0x12   : > { %398 = vmatprep.subr.msk.mxu0 %vm224_vm0, %v219_v4 }
  0x13   : > { %399 = vmatpush1.msk.msra.mxu0 %vm224_vm0, %v211_v3 }
  0x14   : > { %400 = vmatmul.mubr.msk.f32.vlgmr.msra.gmra.mxu0 %vm220_vm1, %v210_v5 }
  0x89   : > { %v216_v6 = vpop.permute.xlu0 %215 }
  0xd4   : > { %v295_v7 = vpop.f32.mrf.mxu0 }
  0xd5   : > { %v296_v8 = vadd.f32 %v295_v7, %v216_v6 }
  0xd6   : > { %v297_v9 = vpop.f32.mrf.mxu0 }
  0xd7   : > { %300 = vst [vmem:[%s208_s27] sm:$0xff] %v296_v8  ;;  %v298_v10 = vadd.f32 %v297_v9, %v216_v6 }
  0xd9   : > { %301 = vst [vmem:[%s208_s27 + $0x8] sm:$0xff] %v298_v10 }
  0xda PF: > { %s13_s14 = sadd.s32 1, %s455_s14   ;;  %s522_s12 = smov %s451_s13 }
  0xdb   : > { %p10_p5 = scmp.ge.s32.totalorder %s13_s14, 4   ;;  %s523_s13 = smov %s525_s15 }
  0xdd   :  { %12 = sbr.rel (!%p10_p5) target bundleno = 2 (0x2), region = 62 }

</bundles_post_ra>
